<compile_context>
chip_gen: v6e
topology: v6e:2x2x1
jax: 0.10.0
libtpu: 0.0.40
codegen_flags: <defaults>
</compile_context>

<pallas_src>
import functools

import jax
import jax.numpy as jnp
from jax.experimental import pallas as pl
from jax.experimental.pallas import tpu as pltpu

LANE_WIDTH = 512       # 4 * 128 lanes
MAX_TILE_ROWS = 256    # (256, 512) f32 block = 512 KiB per pipeline buffer


def _round_up(a: int, b: int) -> int:
    return ((a + b - 1) // b) * b


def _dropout_kernel(bits_ref, xr_ref, xi_ref, or_ref, oi_ref, *, threshold, scale):
    # keep  <=>  bits < threshold, with P(keep) = threshold / 2**32 = 1 - p.
    keep = bits_ref[...] < jnp.uint32(threshold)
    mask = jnp.where(keep, jnp.float32(scale), jnp.float32(0.0))
    # Same real-valued mask applied to both the real and imaginary planes.
    or_ref[...] = xr_ref[...] * mask
    oi_ref[...] = xi_ref[...] * mask


@functools.partial(jax.jit, static_argnames=("p",))
def _complex_dropout_impl(x, key, p):
    keep_prob = 1.0 - p
    scale = 1.0 / keep_prob
    threshold = min(int(round(keep_prob * 4294967296.0)), 4294967295)

    shape = x.shape
    n = 1
    for s in shape:
        n *= s

    rows_needed = pl.cdiv(n, LANE_WIDTH)
    block_rows = min(MAX_TILE_ROWS, _round_up(max(rows_needed, 1), 8))
    padded_rows = _round_up(rows_needed, block_rows)
    padded_n = padded_rows * LANE_WIDTH
    grid = (padded_rows // block_rows,)

    # TODO(synk): Pallas TPU has no complex dtype support, so the re/im split and the
    # final reassembly happen as (fused, jitted) XLA ops around the pallas_call.
    xr = jnp.real(x).astype(jnp.float32).reshape(-1)
    xi = jnp.imag(x).astype(jnp.float32).reshape(-1)
    pad = padded_n - n
    if pad:
        xr = jnp.pad(xr, (0, pad))
        xi = jnp.pad(xi, (0, pad))
    xr = xr.reshape(padded_rows, LANE_WIDTH)
    xi = xi.reshape(padded_rows, LANE_WIDTH)

    # One random word per complex element; mask is shared by re/im like in PyTorch.
    bits = jax.random.bits(key, (padded_rows, LANE_WIDTH), dtype=jnp.uint32)

    spec = pl.BlockSpec((block_rows, LANE_WIDTH), lambda i: (i, 0))
    kernel = functools.partial(_dropout_kernel, threshold=threshold, scale=scale)

    or_, oi_ = pl.pallas_call(
        kernel,
        out_shape=(
            jax.ShapeDtypeStruct((padded_rows, LANE_WIDTH), jnp.float32),
            jax.ShapeDtypeStruct((padded_rows, LANE_WIDTH), jnp.float32),
        ),
        grid=grid,
        in_specs=[spec, spec, spec],
        out_specs=(spec, spec),
        compiler_params=pltpu.CompilerParams(
            dimension_semantics=("parallel",),          # v7x: use both TensorCores
            vmem_limit_bytes=32 * 1024 * 1024,          # safe on v5e/v6e/v7x
        ),
    )(bits, xr, xi)

    out = jax.lax.complex(or_.reshape(-1)[:n], oi_.reshape(-1)[:n])
    return out.reshape(shape)


def complex_dropout(x, p=0.5, *, key=None, training=True):
    """Pallas implementation of ComplexDropout.forward (inverted dropout, shared re/im mask)."""
    if p == 0.0 or not training:
        return x
    if p >= 1.0:
        return jnp.zeros_like(x)
    if key is None:
        key = jax.random.PRNGKey(0)
    return _complex_dropout_impl(x, key, float(p))


if __name__ == "__main__":
    root = jax.random.PRNGKey(0)
    kr, ki, kdrop = jax.random.split(root, 3)
    B, C, H, W = 2, 4, 16, 16
    xr = jax.random.normal(kr, (B, C, H, W), dtype=jnp.float32)
    xi = jax.random.normal(ki, (B, C, H, W), dtype=jnp.float32)
    x = jax.lax.complex(xr, xi)  # complex64

    p = 0.5
    out = complex_dropout(x, p=p, key=kdrop, training=True)
    out = jax.block_until_ready(out)

    # Every output element is either 0 or x / keep_prob.
    keep_prob = 1.0 - p
    scaled = x / keep_prob
    is_zero = out == 0
    matches = jnp.isclose(out, scaled, rtol=1e-5, atol=1e-6)
    assert bool(jnp.all(is_zero | matches)), "dropout output not in {0, x/keep_prob}"

    # Keep rate should be close to keep_prob.
    keep_rate = float(jnp.mean((~is_zero).astype(jnp.float32)))
    assert 0.3 < keep_rate < 0.7, f"unexpected keep rate {keep_rate}"

    # The real-valued mask must be shared between real and imaginary parts.
    nz = (xr != 0.0) & (xi != 0.0)
    same_mask = (out.real == 0.0) == (out.imag == 0.0)
    assert bool(jnp.all(jnp.where(nz, same_mask, True))), "mask not shared across re/im"

    # Eval mode / p == 0.0 are identity.
    assert bool(jnp.all(complex_dropout(x, p=p, training=False) == x))
    assert bool(jnp.all(complex_dropout(x, p=0.0, training=True) == x))

    print("KERNEL_OK")
</pallas_src>

<mosaic_0001>
module attributes {stable_mosaic.version = 11 : i64} {
  func.func @_dropout_kernel(%arg0: i32, %arg1: memref<8x512xi32, #tpu.memory_space<vmem>>, %arg2: memref<8x512xf32, #tpu.memory_space<vmem>>, %arg3: memref<8x512xf32, #tpu.memory_space<vmem>>, %arg4: memref<8x512xf32, #tpu.memory_space<vmem>>, %arg5: memref<8x512xf32, #tpu.memory_space<vmem>>) attributes {dimension_semantics = [#tpu.dimension_semantics<parallel>], iteration_bounds = array<i64: 1>, scalar_prefetch = 0 : i64, scratch_operands = 0 : i64, tpu.core_type = #tpu.core_type<tc>, window_params = [{transform_indices = @transform_0, window_bounds = array<i64: 8, 512>}, {transform_indices = @transform_1, window_bounds = array<i64: 8, 512>}, {transform_indices = @transform_2, window_bounds = array<i64: 8, 512>}, {transform_indices = @transform_3, window_bounds = array<i64: 8, 512>}, {transform_indices = @transform_4, window_bounds = array<i64: 8, 512>}]} {
    %c0 = arith.constant 0 : index
    %c0_0 = arith.constant 0 : index
    %0 = vector.load %arg1[%c0, %c0_0] : memref<8x512xi32, #tpu.memory_space<vmem>>, vector<8x512xi32>
    %c-2147483648_i32 = arith.constant -2147483648 : i32
    %1 = vector.broadcast %c-2147483648_i32 : i32 to vector<8x512xi32>
    %2 = arith.cmpi ult, %0, %1 : vector<8x512xi32>
    %cst = arith.constant 2.000000e+00 : f32
    %cst_1 = arith.constant 0.000000e+00 : f32
    %3 = vector.broadcast %cst : f32 to vector<8x512xf32>
    %4 = vector.broadcast %cst_1 : f32 to vector<8x512xf32>
    %5 = arith.select %2, %3, %4 : vector<8x512xi1>, vector<8x512xf32>
    %c0_2 = arith.constant 0 : index
    %c0_3 = arith.constant 0 : index
    %6 = vector.load %arg2[%c0_2, %c0_3] : memref<8x512xf32, #tpu.memory_space<vmem>>, vector<8x512xf32>
    %7 = arith.mulf %6, %5 : vector<8x512xf32>
    %c0_4 = arith.constant 0 : index
    %c0_5 = arith.constant 0 : index
    %8 = vector.load %arg4[%c0_4, %c0_5] : memref<8x512xf32, #tpu.memory_space<vmem>>, vector<8x512xf32>
    tpu.vector_store %arg4[%c0_4, %c0_5], %7 {strides = array<i32>} : memref<8x512xf32, #tpu.memory_space<vmem>>, vector<8x512xf32>,
    %c0_6 = arith.constant 0 : index
    %c0_7 = arith.constant 0 : index
    %9 = vector.load %arg3[%c0_6, %c0_7] : memref<8x512xf32, #tpu.memory_space<vmem>>, vector<8x512xf32>
    %10 = arith.mulf %9, %5 : vector<8x512xf32>
    %c0_8 = arith.constant 0 : index
    %c0_9 = arith.constant 0 : index
    %11 = vector.load %arg5[%c0_8, %c0_9] : memref<8x512xf32, #tpu.memory_space<vmem>>, vector<8x512xf32>
    tpu.vector_store %arg5[%c0_8, %c0_9], %10 {strides = array<i32>} : memref<8x512xf32, #tpu.memory_space<vmem>>, vector<8x512xf32>,
    return
  }
  func.func @transform_0(%arg0: i32) -> (i32, i32) {
    %c0_i32 = arith.constant 0 : i32
    %c0_i32_0 = arith.constant 0 : i32
    return %arg0, %c0_i32 : i32, i32
  }
  func.func @transform_1(%arg0: i32) -> (i32, i32) {
    %c0_i32 = arith.constant 0 : i32
    %c0_i32_0 = arith.constant 0 : i32
    return %arg0, %c0_i32 : i32, i32
  }
  func.func @transform_2(%arg0: i32) -> (i32, i32) {
    %c0_i32 = arith.constant 0 : i32
    %c0_i32_0 = arith.constant 0 : i32
    return %arg0, %c0_i32 : i32, i32
  }
  func.func @transform_3(%arg0: i32) -> (i32, i32) {
    %c0_i32 = arith.constant 0 : i32
    %c0_i32_0 = arith.constant 0 : i32
    return %arg0, %c0_i32 : i32, i32
  }
  func.func @transform_4(%arg0: i32) -> (i32, i32) {
    %c0_i32 = arith.constant 0 : i32
    %c0_i32_0 = arith.constant 0 : i32
    return %arg0, %c0_i32 : i32, i32
  }
}

</mosaic_0001>

<bundles_post_ra>
// kernel: custom-call.1
= control target key start
LH: loop header
LB: loop body
LE: loop exit
PB: predicated region body
PF: predicated region fallthrough
CT: control target
= control target key end

     0   :  { %s51_s0 = inlined_call_operand.hbm [shape: c64[2,4,16,16], index: 0, kind: input, shape index: {}]   ;;  %s52_s1 = inlined_call_operand.vmem [shape: f32[2,4,16,16], index: 1, kind: output, shape index: {}]  }
   0x1   :  { %s2_s8 = scalar_lea.hbm %s51_s0, 2048 }
   0x2   :  { %3 = vsyncpa [#allocation0], 0  ;;  %s4_s11 = sshll.u32 %s52_s1, 4  ;;  %s5_s11 = int_to_ptr.vmem [resolvable:$true] %s4_s11 }
   0x3   :  { %s20_s12 = scalar_lea.vmem %s5_s11, 2048  ;;  %p25_p1 = scmp.lt.s32.totalorder %s5_s11, %s5_s11 }
   0x4   :  { %p21_p0 = scmp.ne.s32.totalorder %s5_s11, %s20_s12  ;;  %p26_p2 = scmp.lt.s32.totalorder %s20_s12, %s20_s12 }
   0x6   :  { %p27_p3 = por %p26_p2, %p25_p1 }
   0x8   :  { %p28_p4 = pnand %p27_p3, %p21_p0 }
   0xa   :  { %31 = shalt.err (!%p28_p4)  }
   0xb   :  { %7 = dma.hbm_to_vmem [thread:$0]  %s2_s8, 2048, %s5_s11, [#allocation0] }
   0xc   :  { %33 = dma.done.wait [#allocation0], 2048  }
   0xd   :  { %34 = vsyncadd [#allocation0], 4294965248 }
   0xe   :  { %9 = vsyncpa [#allocation0], 1 }

// kernel: custom-call
= control target key start
LH: loop header
LB: loop body
LE: loop exit
PB: predicated region body
PF: predicated region fallthrough
CT: control target
= control target key end

     0   :  { %2 = vsyncpa [#allocation0], 0  ;;  %s47_s0 = inlined_call_operand.hbm [shape: c64[2,4,16,16], index: 0, kind: input, shape index: {}]   ;;  %s48_s1 = inlined_call_operand.vmem [shape: f32[2,4,16,16], index: 1, kind: output, shape index: {}]  }
   0x1   :  { %s3_s8 = sshll.u32 %s48_s1, 4  ;;  %s4_s8 = int_to_ptr.vmem [resolvable:$true] %s3_s8 }
   0x2   :  { %s17_s9 = scalar_lea.vmem %s4_s8, 2048  ;;  %p22_p1 = scmp.lt.s32.totalorder %s4_s8, %s4_s8 }
   0x3   :  { %p18_p0 = scmp.ne.s32.totalorder %s4_s8, %s17_s9  ;;  %p23_p2 = scmp.lt.s32.totalorder %s17_s9, %s17_s9 }
   0x5   :  { %p24_p3 = por %p23_p2, %p22_p1 }
   0x7   :  { %p25_p4 = pnand %p24_p3, %p18_p0 }
   0x9   :  { %28 = shalt.err (!%p25_p4)  }
   0xa   :  { %6 = dma.hbm_to_vmem [thread:$0]  %s47_s0, 2048, %s4_s8, [#allocation0] }
   0xb   :  { %29 = dma.done.wait [#allocation0], 2048  }
   0xc   :  { %30 = vsyncadd [#allocation0], 4294965248 }
   0xd   :  { %8 = vsyncpa [#allocation0], 1 }

// kernel: custom-call.2
= control target key start
LH: loop header
LB: loop body
LE: loop exit
PB: predicated region body
PF: predicated region fallthrough
CT: control target
= control target key end

     0   :  { %s92_s0 = inlined_call_operand.vmem [shape: f32[2,4,16,16], index: 0, kind: input, shape index: {}]   ;;  %s93_s1 = inlined_call_operand.vmem [shape: f32[2,4,16,16], index: 1, kind: input, shape index: {}]   ;;  %s94_s2 = inlined_call_operand.hbm [shape: c64[2,4,16,16], index: 2, kind: output, shape index: {}]  }
   0x1   :  { %s3_s11 = scalar_lea.hbm %s94_s2, 2048 }
   0x2   :  { %4 = vsyncpa [#allocation0], 0  ;;  %s5_s14 = sshll.u32 %s92_s0, 4  ;;  %s6_s14 = int_to_ptr.vmem [resolvable:$true] %s5_s14 }
   0x3   :  { %s18_s15 = scalar_lea.vmem %s6_s14, 2048  ;;  %p23_p1 = scmp.lt.s32.totalorder %s6_s14, %s6_s14 }
   0x4   :  { %p19_p0 = scmp.ne.s32.totalorder %s6_s14, %s18_s15  ;;  %p24_p2 = scmp.lt.s32.totalorder %s18_s15, %s18_s15 }
   0x6   :  { %p25_p3 = por %p24_p2, %p23_p1 }
   0x8   :  { %p26_p4 = pnand %p25_p3, %p19_p0 }
   0xa   :  { %29 = shalt.err (!%p26_p4)  }
   0xb   :  { %8 = dma.vmem_to_hbm [thread:$0]  %s6_s14, 2048, %s94_s2, [#allocation0] }
   0xc   :  { %61 = dma.done.wait [#allocation0], 2048  }
   0xd   :  { %62 = vsyncadd [#allocation0], 4294965248 }
   0xe   :  { %10 = vsyncpa [#allocation0], 1 }
   0xf   :  { %11 = vsyncpa [#allocation1], 0  ;;  %s12_s0 = sshll.u32 %s93_s1, 4  ;;  %s13_s0 = int_to_ptr.vmem [resolvable:$true] %s12_s0 }
  0x10   :  { %s38_s20 = scalar_lea.vmem %s13_s0, 2048  ;;  %p43_p6 = scmp.lt.s32.totalorder %s13_s0, %s13_s0 }
  0x11   :  { %p39_p5 = scmp.ne.s32.totalorder %s13_s0, %s38_s20  ;;  %p44_p7 = scmp.lt.s32.totalorder %s38_s20, %s38_s20 }
  0x13   :  { %p45_p8 = por %p44_p7, %p43_p6 }
  0x15   :  { %p46_p9 = pnand %p45_p8, %p39_p5 }
  0x17   :  { %49 = shalt.err (!%p46_p9)  }
  0x18   :  { %15 = dma.vmem_to_hbm [thread:$0]  %s13_s0, 2048, %s3_s11, [#allocation1] }
  0x19   :  { %63 = dma.done.wait [#allocation1], 2048  }
  0x1a   :  { %64 = vsyncadd [#allocation1], 4294965248 }
  0x1b   :  { %17 = vsyncpa [#allocation1], 1 }

// kernel: _complex_dropout_impl.1
= control target key start
LH: loop header
LB: loop body
LE: loop exit
PB: predicated region body
PF: predicated region fallthrough
CT: control target
= control target key end

     0   :  { %v61_v6 = vmov 0.0   ;;  %s147_s0 = inlined_call_operand.vmem [shape: u32[8,512], index: 0, kind: input, shape index: {}]   ;;  %s148_s1 = inlined_call_operand.vmem [shape: f32[8,512], index: 1, kind: input, shape index: {}]   ;;  %s149_s2 = inlined_call_operand.vmem [shape: f32[8,512], index: 2, kind: input, shape index: {}]   ;;  %s150_s3 = inlined_call_operand.vmem [shape: f32[8,512], index: 3, kind: output, shape index: {0}]   ;;  %s151_s4 = inlined_call_operand.vmem [shape: f32[8,512], index: 4, kind: output, shape index: {1}]  }
   0x1   :  { %v16_v0 = vld [vmem:[%s147_s0] sm:$0xff]  ;;  %v17_v2 = vld [vmem:[%s147_s0 + $0x8] sm:$0xff]  ;;  %v18_v4 = vld [vmem:[%s147_s0 + $0x10] sm:$0xff] }
   0x2   :  { %v28_v1 = vld [vmem:[%s148_s1] sm:$0xff]  ;;  %vm20_vm0 = vcmp.lt.u32.totalorder %v16_v0, 2147483648  ;;  %vm21_vm1 = vcmp.lt.u32.totalorder %v17_v2, 2147483648  ;;  %v29_v3 = vld [vmem:[%s148_s1 + $0x8] sm:$0xff]  ;;  %v30_v5 = vld [vmem:[%s148_s1 + $0x10] sm:$0xff]  ;;  %vm22_vm2 = vcmp.lt.u32.totalorder %v18_v4, 2147483648 }
   0x3   :  { %v24_v7 = vsel %vm20_vm0, 2.0, %v61_v6  ;;  %v25_v8 = vsel %vm21_vm1, 2.0, %v61_v6  ;;  %v19_v9 = vld [vmem:[%s147_s0 + $0x18] sm:$0xff]  ;;  %v40_v11 = vld [vmem:[%s149_s2] sm:$0xff]  ;;  %v26_v14 = vsel %vm22_vm2, 2.0, %v61_v6  ;;  %v41_v15 = vld [vmem:[%s149_s2 + $0x8] sm:$0xff] }
   0x4   :  { %v31_v10 = vld [vmem:[%s148_s1 + $0x18] sm:$0xff]  ;;  %v32_v12 = vmul.f32 %v28_v1, %v24_v7  ;;  %v33_v13 = vmul.f32 %v29_v3, %v25_v8  ;;  %vm23_vm3 = vcmp.lt.u32.totalorder %v19_v9, 2147483648  ;;  %v42_v16 = vld [vmem:[%s149_s2 + $0x10] sm:$0xff]  ;;  %v34_v18 = vmul.f32 %v30_v5, %v26_v14 }
   0x5   :  { %v43_v17 = vld [vmem:[%s149_s2 + $0x18] sm:$0xff]  ;;  %v27_v19 = vsel %vm23_vm3, 2.0, %v61_v6  ;;  %v44_v20 = vmul.f32 %v40_v11, %v24_v7  ;;  %v45_v21 = vmul.f32 %v41_v15, %v25_v8  ;;  %v46_v23 = vmul.f32 %v42_v16, %v26_v14 }
   0x6   :  { %36 = vst [vmem:[%s150_s3] sm:$0xff] %v32_v12  ;;  %37 = vst [vmem:[%s150_s3 + $0x8] sm:$0xff] %v33_v13  ;;  %v35_v22 = vmul.f32 %v31_v10, %v27_v19  ;;  %v47_v24 = vmul.f32 %v43_v17, %v27_v19 }
   0x7   :  { %38 = vst [vmem:[%s150_s3 + $0x10] sm:$0xff] %v34_v18  ;;  %48 = vst [vmem:[%s151_s4] sm:$0xff] %v44_v20 }
   0x8   :  { %49 = vst [vmem:[%s151_s4 + $0x8] sm:$0xff] %v45_v21  ;;  %39 = vst [vmem:[%s150_s3 + $0x18] sm:$0xff] %v35_v22 }
   0x9   :  { %50 = vst [vmem:[%s151_s4 + $0x10] sm:$0xff] %v46_v23  ;;  %51 = vst [vmem:[%s151_s4 + $0x18] sm:$0xff] %v47_v24 }

</bundles_post_ra>
